<compile_context>
chip_gen: v7x
topology: tpu7x:2x2x1
jax: 0.10.0
libtpu: 0.0.40
codegen_flags: <defaults>
</compile_context>

<pallas_src>
import functools

import jax
import jax.numpy as jnp
from jax.experimental import pallas as pl
from jax.experimental.pallas import tpu as pltpu

LN_EPS = 1e-5


def _round_up(x, m):
    return (x + m - 1) // m * m


def residual_kernel(x_ref, gamma_ref, beta_ref, w_ref, b_ref, o_ref, y_ref,
                    *, tn, dim):
    j = pl.program_id(1)

    # LayerNorm (f32 math) once per row tile; result cached in bf16 VMEM scratch
    # and reused by every column tile of the same row tile.
    @pl.when(j == 0)
    def _():
        x = x_ref[...].astype(jnp.float32)                       # (tm, dim)
        mean = jnp.mean(x, axis=-1, keepdims=True)
        centered = x - mean
        var = jnp.mean(centered * centered, axis=-1, keepdims=True)
        gamma = gamma_ref[...].astype(jnp.float32)               # (1, dim)
        beta = beta_ref[...].astype(jnp.float32)                 # (1, dim)
        y = centered * jax.lax.rsqrt(var + LN_EPS) * gamma + beta
        y_ref[...] = y.astype(y_ref.dtype)

    # Sublayer: (tm, dim) @ (dim, tn) on the MXU. bf16 operands, f32 acc.
    z = jnp.dot(y_ref[...], w_ref[...], preferred_element_type=jnp.float32)

    # Residual + bias epilogue on the current column tile.
    # Dropout(p=0.0) is identity (eval semantics).
    if tn == dim:
        x_cols = x_ref[...]                                      # (tm, dim)
    else:
        col0 = pl.multiple_of(j * tn, tn)
        x_cols = x_ref[:, pl.ds(col0, tn)]                       # (tm, tn)
    bias = b_ref[...].astype(jnp.float32)                        # (1, tn)
    o_ref[...] = (x_cols.astype(jnp.float32) + (z + bias)).astype(o_ref.dtype)


def residual_connection(x, gamma, beta, w, b):
    """x: (batch, seq, dim). Returns x + (LayerNorm(x) @ w + b)."""
    batch, seq, dim = x.shape
    n = batch * seq

    # Row tile: target ~4 MiB of f32 activations per tile (amortizes ~0.35 us
    # per-grid-step overhead on this HBM-bound kernel). Multiple of 8, clamped
    # to [256, 4096] and to the (8-aligned) row count for tiny inputs.
    tm = (4 << 20) // (dim * 4)
    tm = max(256, min(4096, tm))
    tm = _round_up(tm, 8)
    tm = min(tm, _round_up(n, 8))
    gi = pl.cdiv(n, tm)

    # Column tile: full dim stays resident for dim <= 2048; larger dims get an
    # output-column axis so resident bf16 W stays bounded (v7x: 64 MiB VMEM).
    tn = dim if dim <= 2048 else 512          # 512 = multiple of 128 and 256
    gj = pl.cdiv(dim, tn)

    x2 = x.reshape(n, dim)
    gamma2 = gamma.reshape(1, dim)
    beta2 = beta.reshape(1, dim)
    b2 = b.reshape(1, dim)
    # bf16 W: half the resident VMEM and MXU-native (cast is cached under jit).
    w_bf16 = w.astype(jnp.bfloat16)

    # VMEM budget per generation: ~3/4 of physical (48 MiB on v7x, 96 MiB on
    # v5e/v6e), so large row tiles aren't clipped by the default scoped limit.
    try:
        vmem_cap = int(pltpu.get_tpu_info().vmem_capacity_bytes)
    except Exception:
        vmem_cap = 64 * 1024 * 1024
    vmem_limit = int(min(100 * 1024 * 1024, (vmem_cap * 3) // 4))

    itemsize = jnp.dtype(x.dtype).itemsize
    cost = pl.CostEstimate(
        flops=2 * n * dim * dim,
        transcendentals=n,                               # one rsqrt per row
        bytes_accessed=(2 * n * dim * itemsize           # x in + out
                        + dim * dim * 2                  # bf16 W
                        + 3 * dim * 4),                  # gamma / beta / bias
    )

    # gamma/beta are grid-constant -> single buffer. W/bias are grid-constant
    # only when there is a single column block; otherwise keep default
    # double-buffering so per-column W DMAs overlap compute.
    const_mode = pl.Buffered(1)
    if gj == 1:
        w_spec = pl.BlockSpec((dim, tn), lambda i, j: (0, j),
                              pipeline_mode=pl.Buffered(1))
        b_spec = pl.BlockSpec((1, tn), lambda i, j: (0, j),
                              pipeline_mode=pl.Buffered(1))
    else:
        w_spec = pl.BlockSpec((dim, tn), lambda i, j: (0, j))
        b_spec = pl.BlockSpec((1, tn), lambda i, j: (0, j))

    kernel = functools.partial(residual_kernel, tn=tn, dim=dim)

    out = pl.pallas_call(
        kernel,
        out_shape=jax.ShapeDtypeStruct((n, dim), x.dtype),
        grid_spec=pltpu.PrefetchScalarGridSpec(
            num_scalar_prefetch=0,
            grid=(gi, gj),                                   # j innermost
            in_specs=[
                pl.BlockSpec((tm, dim), lambda i, j: (i, 0)),        # x rows
                pl.BlockSpec((1, dim), lambda i, j: (0, 0),          # gamma
                             pipeline_mode=const_mode),
                pl.BlockSpec((1, dim), lambda i, j: (0, 0),          # beta
                             pipeline_mode=const_mode),
                w_spec,                                              # W
                b_spec,                                              # bias
            ],
            out_specs=pl.BlockSpec((tm, tn), lambda i, j: (i, j)),
            scratch_shapes=[pltpu.VMEM((tm, dim), jnp.bfloat16)],    # LN(x)
        ),
        compiler_params=pltpu.CompilerParams(
            # Row axis shards across TensorCores (v7x megacore); column axis is
            # sequential because the LN scratch is reused across it.
            dimension_semantics=("parallel", "arbitrary"),
            vmem_limit_bytes=vmem_limit,
        ),
        cost_estimate=cost,
    )(x2, gamma2, beta2, w_bf16, b2)

    return out.reshape(batch, seq, dim)


def reference(x, gamma, beta, w, b):
    xf = x.astype(jnp.float32)
    mean = jnp.mean(xf, axis=-1, keepdims=True)
    var = jnp.mean((xf - mean) ** 2, axis=-1, keepdims=True)
    xn = (xf - mean) * jax.lax.rsqrt(var + LN_EPS)
    y = xn * gamma + beta
    z = y @ w.astype(jnp.float32) + b
    return (xf + z).astype(x.dtype)


if __name__ == "__main__":
    # dim=128 keeps output stores lane-dense (dim % 128 == 0); small demo shape.
    batch, seq, dim = 2, 8, 128
    key = jax.random.PRNGKey(0)
    kx, kw = jax.random.split(key)

    x = jax.random.normal(kx, (batch, seq, dim), dtype=jnp.float32)

    # Deterministic parameters (nn.LayerNorm default init; synthetic linear W).
    gamma = jnp.ones((dim,), jnp.float32)             # LayerNorm weight
    beta = jnp.zeros((dim,), jnp.float32)             # LayerNorm bias
    w = jax.random.normal(kw, (dim, dim), jnp.float32) * (1.0 / jnp.sqrt(dim))
    b = jnp.zeros((dim,), jnp.float32)

    out = residual_connection(x, gamma, beta, w, b)
    jax.block_until_ready(out)

    ref = reference(x, gamma, beta, w, b)
    # Tolerance loosened vs the pure-f32 reference because the sublayer matmul
    # uses bf16 operands (f32 accumulation) on the MXU.
    assert out.shape == ref.shape
    assert jnp.allclose(out, ref, atol=5e-2, rtol=5e-2), "mismatch vs reference"

    print("KERNEL_OK")
</pallas_src>

<mosaic_0001>
module attributes {stable_mosaic.version = 11 : i64} {
  func.func @residual_kernel(%arg0: i32, %arg1: i32, %arg2: memref<16x128xf32, #tpu.memory_space<vmem>>, %arg3: memref<1x128xf32, #tpu.memory_space<vmem>>, %arg4: memref<1x128xf32, #tpu.memory_space<vmem>>, %arg5: memref<128x128xbf16, #tpu.memory_space<vmem>>, %arg6: memref<1x128xf32, #tpu.memory_space<vmem>>, %arg7: memref<16x128xf32, #tpu.memory_space<vmem>>, %arg8: memref<16x128xbf16, #tpu.memory_space<vmem>>) attributes {dimension_semantics = [#tpu.dimension_semantics<parallel>, #tpu.dimension_semantics<arbitrary>], iteration_bounds = array<i64: 1, 1>, scalar_prefetch = 0 : i64, scratch_operands = 1 : i64, tpu.core_type = #tpu.core_type<tc>, window_params = [{transform_indices = @transform_0, window_bounds = array<i64: 16, 128>}, {pipeline_mode = #tpu.pipeline_mode<synchronous>, transform_indices = @transform_1, window_bounds = array<i64: 1, 128>}, {pipeline_mode = #tpu.pipeline_mode<synchronous>, transform_indices = @transform_2, window_bounds = array<i64: 1, 128>}, {pipeline_mode = #tpu.pipeline_mode<synchronous>, transform_indices = @transform_3, window_bounds = array<i64: 128, 128>}, {pipeline_mode = #tpu.pipeline_mode<synchronous>, transform_indices = @transform_4, window_bounds = array<i64: 1, 128>}, {transform_indices = @transform_5, window_bounds = array<i64: 16, 128>}]} {
    %c0_i32 = arith.constant 0 : i32
    %0 = arith.cmpi eq, %arg1, %c0_i32 : i32
    %1 = arith.extui %0 : i1 to i32
    %c0_i32_0 = arith.constant 0 : i32
    %2 = arith.cmpi ne, %1, %c0_i32_0 : i32
    scf.if %2 {
      %c0_10 = arith.constant 0 : index
      %c0_11 = arith.constant 0 : index
      %12 = vector.load %arg2[%c0_10, %c0_11] : memref<16x128xf32, #tpu.memory_space<vmem>>, vector<16x128xf32>
      %cst_12 = arith.constant dense<0.000000e+00> : vector<16xf32>
      %13 = vector.multi_reduction <add>, %12, %cst_12 [1] : vector<16x128xf32> to vector<16xf32>
      %14 = vector.shape_cast %13 : vector<16xf32> to vector<16x1xf32>
      %cst_13 = arith.constant 1.280000e+02 : f32
      %15 = vector.broadcast %cst_13 : f32 to vector<16x1xf32>
      %16 = arith.divf %14, %15 : vector<16x1xf32>
      %17 = vector.broadcast %16 : vector<16x1xf32> to vector<16x128xf32>
      %18 = arith.subf %12, %17 : vector<16x128xf32>
      %19 = arith.mulf %18, %18 : vector<16x128xf32>
      %cst_14 = arith.constant dense<0.000000e+00> : vector<16xf32>
      %20 = vector.multi_reduction <add>, %19, %cst_14 [1] : vector<16x128xf32> to vector<16xf32>
      %21 = vector.shape_cast %20 : vector<16xf32> to vector<16x1xf32>
      %cst_15 = arith.constant 1.280000e+02 : f32
      %22 = vector.broadcast %cst_15 : f32 to vector<16x1xf32>
      %23 = arith.divf %21, %22 : vector<16x1xf32>
      %c0_16 = arith.constant 0 : index
      %c0_17 = arith.constant 0 : index
      %24 = vector.load %arg3[%c0_16, %c0_17] : memref<1x128xf32, #tpu.memory_space<vmem>>, vector<1x128xf32>
      %c0_18 = arith.constant 0 : index
      %c0_19 = arith.constant 0 : index
      %25 = vector.load %arg4[%c0_18, %c0_19] : memref<1x128xf32, #tpu.memory_space<vmem>>, vector<1x128xf32>
      %cst_20 = arith.constant 9.99999974E-6 : f32
      %26 = vector.broadcast %cst_20 : f32 to vector<16x1xf32>
      %27 = arith.addf %23, %26 : vector<16x1xf32>
      %28 = math.rsqrt %27 : vector<16x1xf32>
      %29 = vector.broadcast %28 : vector<16x1xf32> to vector<16x128xf32>
      %30 = arith.mulf %18, %29 : vector<16x128xf32>
      %31 = vector.broadcast %24 : vector<1x128xf32> to vector<16x128xf32>
      %32 = arith.mulf %30, %31 : vector<16x128xf32>
      %33 = vector.broadcast %25 : vector<1x128xf32> to vector<16x128xf32>
      %34 = arith.addf %32, %33 : vector<16x128xf32>
      %35 = arith.truncf %34 : vector<16x128xf32> to vector<16x128xbf16>
      %c0_21 = arith.constant 0 : index
      %c0_22 = arith.constant 0 : index
      %36 = vector.load %arg8[%c0_21, %c0_22] : memref<16x128xbf16, #tpu.memory_space<vmem>>, vector<16x128xbf16>
      tpu.vector_store %arg8[%c0_21, %c0_22], %35 {strides = array<i32>} : memref<16x128xbf16, #tpu.memory_space<vmem>>, vector<16x128xbf16>,
    } else {
    }
    %c0 = arith.constant 0 : index
    %c0_1 = arith.constant 0 : index
    %3 = vector.load %arg8[%c0, %c0_1] : memref<16x128xbf16, #tpu.memory_space<vmem>>, vector<16x128xbf16>
    %c0_2 = arith.constant 0 : index
    %c0_3 = arith.constant 0 : index
    %4 = vector.load %arg5[%c0_2, %c0_3] : memref<128x128xbf16, #tpu.memory_space<vmem>>, vector<128x128xbf16>
    %cst = arith.constant dense<0.000000e+00> : vector<16x128xf32>
    %5 = tpu.matmul %3, %4, %cst {dimension_numbers = #tpu.dot_dimension_numbers<[1], [0], [0], [1], [0, 0, 1, 1], [], []>} : vector<16x128xbf16>, vector<128x128xbf16>, vector<16x128xf32> -> vector<16x128xf32>
    %c0_4 = arith.constant 0 : index
    %c0_5 = arith.constant 0 : index
    %6 = vector.load %arg2[%c0_4, %c0_5] : memref<16x128xf32, #tpu.memory_space<vmem>>, vector<16x128xf32>
    %c0_6 = arith.constant 0 : index
    %c0_7 = arith.constant 0 : index
    %7 = vector.load %arg6[%c0_6, %c0_7] : memref<1x128xf32, #tpu.memory_space<vmem>>, vector<1x128xf32>
    %8 = vector.broadcast %7 : vector<1x128xf32> to vector<16x128xf32>
    %9 = arith.addf %5, %8 : vector<16x128xf32>
    %10 = arith.addf %6, %9 : vector<16x128xf32>
    %c0_8 = arith.constant 0 : index
    %c0_9 = arith.constant 0 : index
    %11 = vector.load %arg7[%c0_8, %c0_9] : memref<16x128xf32, #tpu.memory_space<vmem>>, vector<16x128xf32>
    tpu.vector_store %arg7[%c0_8, %c0_9], %10 {strides = array<i32>} : memref<16x128xf32, #tpu.memory_space<vmem>>, vector<16x128xf32>,
    return
  }
  func.func @transform_0(%arg0: i32, %arg1: i32) -> (i32, i32) {
    %c0_i32 = arith.constant 0 : i32
    %c0_i32_0 = arith.constant 0 : i32
    return %arg0, %c0_i32 : i32, i32
  }
  func.func @transform_1(%arg0: i32, %arg1: i32) -> (i32, i32) {
    %c0_i32 = arith.constant 0 : i32
    %c0_i32_0 = arith.constant 0 : i32
    %c0_i32_1 = arith.constant 0 : i32
    return %c0_i32, %c0_i32_0 : i32, i32
  }
  func.func @transform_2(%arg0: i32, %arg1: i32) -> (i32, i32) {
    %c0_i32 = arith.constant 0 : i32
    %c0_i32_0 = arith.constant 0 : i32
    %c0_i32_1 = arith.constant 0 : i32
    return %c0_i32, %c0_i32_0 : i32, i32
  }
  func.func @transform_3(%arg0: i32, %arg1: i32) -> (i32, i32) {
    %c0_i32 = arith.constant 0 : i32
    %c0_i32_0 = arith.constant 0 : i32
    return %c0_i32, %arg1 : i32, i32
  }
  func.func @transform_4(%arg0: i32, %arg1: i32) -> (i32, i32) {
    %c0_i32 = arith.constant 0 : i32
    %c0_i32_0 = arith.constant 0 : i32
    return %c0_i32, %arg1 : i32, i32
  }
  func.func @transform_5(%arg0: i32, %arg1: i32) -> (i32, i32) {
    %c0_i32 = arith.constant 0 : i32
    return %arg0, %arg1 : i32, i32
  }
}

</mosaic_0001>

<bundles_post_ra>
// kernel: tpu_custom_call.1
= control target key start
LH: loop header
LB: loop body
LE: loop exit
PB: predicated region body
PF: predicated region fallthrough
CT: control target
= control target key end

     0   :  { %10 = vsyncpa [#allocation4], 0  ;;  %s469_s0 = inlined_call_operand.hbm [shape: f32[16,128], index: 0, kind: input, shape index: {}]   ;;  %s470_s1 = inlined_call_operand.vmem [shape: f32[1,128], index: 1, kind: input, shape index: {}]   ;;  %s471_s2 = inlined_call_operand.vmem [shape: f32[1,128], index: 2, kind: input, shape index: {}]   ;;  %s472_s3 = inlined_call_operand.hbm [shape: bf16[128,128], index: 3, kind: input, shape index: {}]   ;;  %s473_s4 = inlined_call_operand.vmem [shape: f32[1,128], index: 4, kind: input, shape index: {}]   ;;  %s474_s5 = inlined_call_operand.hbm [shape: f32[16,128], index: 5, kind: output, shape index: {}]  }
   0x1   :  { %11 = vsyncpa [#allocation7], 0 }
   0x2   :  { %12 = vsyncpa [#allocation5], 0  ;;  %s369_s18 = smov [#allocation3]   ;;  %s297_s22 = scalar_lea.hbm %s469_s0, 256 }
   0x3   :  { %s18_s19 = sshll.u32 %s369_s18, 4  ;;  %p298_p0 = scmp.ne.s32.totalorder %s469_s0, %s297_s22  ;;  %s19_s19 = int_to_ptr.vmem [resolvable:$true] %s18_s19 }
   0x4   :  { %p301_p1 = scmp.lt.u32.totalorder %s297_s22, %s469_s0 }
   0x6   :  { %p303_p2 = pnand %p301_p1, %p298_p0 }
   0x8   :  { %306 = shalt.err (!%p303_p2)
}
   0x9   :  { %s307_s27 = scalar_lea.vmem %s19_s19, 256  ;;  %p312_p4 = scmp.lt.s32.totalorder %s19_s19, %s19_s19 }
   0xa   :  { %p308_p3 = scmp.ne.s32.totalorder %s19_s19, %s307_s27  ;;  %p313_p5 = scmp.lt.s32.totalorder %s307_s27, %s307_s27 }
   0xc   :  { %p314_p6 = por %p313_p5, %p312_p4 }
   0xe   :  { %p315_p7 = pnand %p314_p6, %p308_p3 }
  0x10   :  { %318 = shalt.err (!%p315_p7)
}
  0x11   :  { %s370_s28 = smov 128   ;;  %s371_s29 = smov 8  }
  0x12   :  { %24 = dma.hbm_to_vmem [thread:$0]  %s469_s0, 256, %s19_s19, [#allocation4], %s370_s28, %s370_s28, %s371_s29  }
  0x13   :  { %s372_s7 = smov [#allocation6]   ;;  %s319_s11 = scalar_lea.hbm %s472_s3, 1024 }
  0x14   :  { %s34_s8 = sshll.u32 %s372_s7, 4  ;;  %p320_p8 = scmp.ne.s32.totalorder %s472_s3, %s319_s11  ;;  %s35_s8 = int_to_ptr.vmem [resolvable:$true] %s34_s8 }
  0x15   :  { %p323_p9 = scmp.lt.u32.totalorder %s319_s11, %s472_s3 }
  0x17   :  { %p325_p10 = pnand %p323_p9, %p320_p8 }
  0x19   :  { %328 = shalt.err (!%p325_p10)
}
  0x1a   :  { %s329_s16 = scalar_lea.vmem %s35_s8, 1024  ;;  %p334_p12 = scmp.lt.s32.totalorder %s35_s8, %s35_s8 }
  0x1b   :  { %p330_p11 = scmp.ne.s32.totalorder %s35_s8, %s329_s16  ;;  %p335_p13 = scmp.lt.s32.totalorder %s329_s16, %s329_s16 }
  0x1d   :  { %p336_p0 = por %p335_p13, %p334_p12 }
  0x1f   :  { %p337_p1 = pnand %p336_p0, %p330_p11 }
  0x21   :  { %340 = shalt.err (!%p337_p1)
}
  0x22   :  { %s373_s0 = smov 64   ;;  %s374_s17 = smov 4  }
  0x23   :  { %40 = dma.hbm_to_vmem [thread:$0]  %s472_s3, 1024, %s35_s8, [#allocation7], %s373_s0, %s373_s0, %s374_s17  }
  0x24   :  { %363 = dma.done.wait [#allocation4], 256  }
  0x25   :  { %364 = vsyncadd [#allocation4], 4294967040 }
  0x26   :  { %365 = dma.done.wait [#allocation7], 1024  }
  0x27   :  { %366 = vsyncadd [#allocation7], 4294966272  ;;  %v435_v0 = vld [vmem:[#allocation3] sm:$0xff]  ;;  %v437_v1 = vld [vmem:[#allocation3 + $0x8] sm:$0xff]  ;;  %v375_v3 = vmov 0.0   ;;  %vm376_vm0 = vmmov 0  }
  0x28   :  { %56 = vadd.xlane.f32.xlu0 %v435_v0  ;;  %v285_v2 = vld [vmem:[#allocation6] sm:$0xff]   ;;  %256 = vmatprep.subr.bf16.mxu0 %v375_v3  ;;  %v286_v12 = vld [vmem:[#allocation6 + $0x8] sm:$0xff]   ;;  %v287_v13 = vld [vmem:[#allocation6 + $0x10] sm:$0xff]  }
  0x29   :  { %257 = vmatpush3.bf16.msra.mxu0 %v285_v2  ;;  %v288_v14 = vld [vmem:[#allocation6 + $0x18] sm:$0xff]   ;;  %v289_v15 = vld [vmem:[#allocation6 + $0x20] sm:$0xff]   ;;  %272 = vmatprep.mubr.msk.bf16.mxu0 %vm376_vm0, %v375_v3  ;;  %v290_v16 = vld [vmem:[#allocation6 + $0x28] sm:$0xff]  }
  0x2a   :  { %258 = vmatprep.subr.bf16.mxu0 %v375_v3  ;;  %v291_v17 = vld [vmem:[#allocation6 + $0x30] sm:$0xff]   ;;  %v292_v18 = vld [vmem:[#allocation6 + $0x38] sm:$0xff]  }
  0x2b   :  { %v236_v27 = vld [vmem:[%s470_s1] ss:$0 sm:$0xff]  ;;  %s377_s1 = smov [#allocation8]  }
  0x2c   :  { %58 = vadd.xlane.f32.xlu0 %v437_v1  ;;  %v237_v31 = vld [vmem:[%s471_s2] ss:$0 sm:$0xff]  ;;  %s223_s25 = sshll.u32 %s377_s1, 4  ;;  %s224_s25 = int_to_ptr.vmem [resolvable:$true] %s223_s25 }
  0x2d   :  { %259 = vmatpush3.bf16.msra.mxu0 %v286_v12  ;;  %v238_v36 = vld [vmem:[%s473_s4] ss:$0 sm:$0xff]  ;;  %s341_s2 = scalar_lea.vmem %s224_s25, 256  ;;  %p346_p3 = scmp.lt.s32.totalorder %s224_s25, %s224_s25 }
  0x2e   :  { %260 = vmatprep.subr.bf16.mxu0 %v375_v3  ;;  %p342_p2 = scmp.ne.s32.totalorder %s224_s25, %s341_s2  ;;  %p347_p4 = scmp.lt.s32.totalorder %s341_s2, %s341_s2 }
  0x30   :  { %p348_p5 = por %p347_p4, %p346_p3 }
  0x31   :  { %261 = vmatpush3.bf16.msra.mxu0 %v287_v13 }
  0x32   :  { %262 = vmatprep.subr.bf16.mxu0 %v375_v3  ;;  %p349_p6 = pnand %p348_p5, %p342_p2 }
  0x35   :  { %263 = vmatpush3.bf16.msra.mxu0 %v288_v14 }
  0x36   :  { %264 = vmatprep.subr.bf16.mxu0 %v375_v3 }
  0x39   :  { %265 = vmatpush3.bf16.msra.mxu0 %v289_v15 }
  0x3a   :  { %266 = vmatprep.subr.bf16.mxu0 %v375_v3 }
  0x3d   :  { %267 = vmatpush3.bf16.msra.mxu0 %v290_v16 }
  0x3e   :  { %268 = vmatprep.subr.bf16.mxu0 %v375_v3 }
  0x41   :  { %269 = vmatpush3.bf16.msra.mxu0 %v291_v17 }
  0x42   :  { %270 = vmatprep.subr.bf16.mxu0 %v375_v3 }
  0x45   :  { %271 = vmatpush3.bf16.msra.mxu0 %v292_v18 }
  0xb5   :  { %v57_v4 = vpop.xlane.xlu0 %56 }
  0xb6   :  { %v61_v5 = vmul.f32 0.0078125, %v57_v4 }
  0xb8   :  { %v63_v6 = vsub.f32 %v435_v0, %v61_v5 }
  0xb9   :  { %v59_v7 = vpop.xlane.xlu0 %58 }
  0xba   :  { %v62_v8 = vmul.f32 0.0078125, %v59_v7  ;;  %v65_v9 = vmul.f32 %v63_v6, %v63_v6 }
  0xbc   :  { %v64_v10 = vsub.f32 %v437_v1, %v62_v8  ;;  %67 = vadd.xlane.f32.xlu1 %v65_v9 }
  0xbe   :  { %v66_v11 = vmul.f32 %v64_v10, %v64_v10 }
  0xc0   :  { %69 = vadd.xlane.f32.xlu1 %v66_v11 }
 0x149   :  { %v68_v19 = vpop.xlane.xlu1 %67 }
 0x14a   :  { %v71_v20 = vmul.f32 0.0078125, %v68_v19 }
 0x14c   :  { %v75_v21 = vadd.f32 1e-05, %v71_v20 }
 0x14d   :  { %v70_v22 = vpop.xlane.xlu1 %69 }
 0x14e   :  { %293 = vrsqrt.f32 %v75_v21  ;;  %v72_v23 = vmul.f32 0.0078125, %v70_v22 }
 0x150   :  { %v76_v24 = vadd.f32 1e-05, %v72_v23 }
 0x152   :  { %295 = vrsqrt.f32 %v76_v24 }
 0x158   :  { %v294_v25 = vpop.eup %293 }
 0x159   :  { %v79_v26 = vmul.f32 %v294_v25, %v63_v6 }
 0x15b   :  { %v87_v30 = vmul.f32 %v236_v27, %v79_v26 }
 0x15c   :  { %v296_v28 = vpop.eup %295 }
 0x15d   :  { %v80_v29 = vmul.f32 %v296_v28, %v64_v10  ;;  %v95_v33 = vadd.f32 %v237_v31, %v87_v30 }
 0x15f   :  { %v88_v32 = vmul.f32 %v236_v27, %v80_v29 }
 0x161   :  { %v96_v34 = vadd.f32 %v237_v31, %v88_v32 }
 0x163   :  { %v97_v35 = vpack.c.bf16 %v96_v34, %v95_v33 }
 0x165   :  { %273 = vmatmul.mubr.bf16.vlgmr.msra.gmra.mrb[0].mxu0 %v97_v35 }
 0x238   :  { %v207_v37 = vpop.f32.mrb[0].mxu0 }
 0x239   :  { %v208_v38 = vadd.f32 %v238_v36, %v207_v37  ;;  %v274_v39 = vpop.f32.mrb[1].mxu0 }
 0x23a   :  { %v210_v40 = vpop.f32.mrb[2].mxu0 }
 0x23b   :  { %v214_v41 = vadd.f32 %v208_v38, %v435_v0  ;;  %v211_v42 = vadd.f32 %v238_v36, %v210_v40  ;;  %v275_v43 = vpop.f32.mrb[3].mxu0 }
 0x23d   :  { %216 = vst [vmem:[#allocation8] sm:$0xff] %v214_v41  ;;  %v215_v44 = vadd.f32 %v211_v42, %v437_v1 }
 0x23f   :  { %217 = vst [vmem:[#allocation8 + $0x8] sm:$0xff] %v215_v44 }
 0x240   :  { %352 = shalt.err (!%p349_p6)
}
 0x241   :  { %s353_s27 = scalar_lea.hbm %s474_s5, 256 }
 0x242   :  { %p354_p7 = scmp.ne.s32.totalorder %s474_s5, %s353_s27  ;;  %p357_p8 = scmp.lt.u32.totalorder %s353_s27, %s474_s5 }
 0x244   :  { %p359_p9 = pnand %p357_p8, %p354_p7 }
 0x246   :  { %362 = shalt.err (!%p359_p9)
}
 0x247   :  { %229 = dma.vmem_to_hbm [thread:$0]  %s224_s25, 256, %s474_s5, [#allocation5], %s370_s28, %s370_s28, %s371_s29  }
 0x248   :  { %367 = dma.done.wait [#allocation5], 256  }
 0x249   :  { %368 = vsyncadd [#allocation5], 4294967040 }
 0x24a   :  { %233 = vsyncpa [#allocation4], 1 }
 0x24b   :  { %234 = vsyncpa [#allocation7], 1 }
 0x24c   :  { %235 = vsyncpa [#allocation5], 1 }

</bundles_post_ra>
